<compile_context>
chip_gen: v6e
topology: v6e:2x2x1
jax: 0.10.0
libtpu: 0.0.40
codegen_flags: <defaults>
</compile_context>

<pallas_src>
import jax
import jax.numpy as jnp
from jax import lax
from jax.experimental import pallas as pl
from jax.experimental.pallas import tpu as pltpu


SUB, LANE = 8, 128


def _round_up(n, m):
    return ((n + m - 1) // m) * m


def _pad_to(a, target, axis):
    pad = target - a.shape[axis]
    if pad <= 0:
        return a
    widths = [(0, 0)] * a.ndim
    widths[axis] = (0, pad)
    return jnp.pad(a, widths)


def lstm_kernel(x_ref, wih_ref, whh_ref, b_ref, pscale_ref, pbias_ref,
                fcw_ref, fcb_ref, out_ref, gx_sc):
    # x_ref:   (T*Bp, Ip)   flattened time-major input (zero padded)
    # wih_ref: (Ip, 4H)     input->gates weights, gate order (i, f, o, g),
    #                       i/f/o columns pre-scaled by 0.5 (tanh-form sigmoid)
    # whh_ref: (H, 4H)      hidden->gates weights, same column layout
    # b_ref:   (1, 4H)      combined bias, same column layout
    # pscale/pbias: (1, 4H) per-lane post-affine (0.5/0.5 for i,f,o ; 1/0 for g)
    # fcw_ref: (H, Cp)  fcb_ref: (1, Cp)  out_ref: (Bp, Cp)
    # gx_sc:   (T, Bp, 4H)  VMEM scratch holding the hoisted input projection
    T, Bp, G4 = gx_sc.shape
    H = G4 // 4

    # ---- hoisted input projection: one matmul for all timesteps (K = Ip = 8) ----
    gx = (jnp.dot(x_ref[...], wih_ref[...], preferred_element_type=jnp.float32)
          + b_ref[...])
    gx_sc[...] = gx.reshape(T, Bp, G4)

    pscale = pscale_ref[...]
    pbias = pbias_ref[...]

    # ---- recurrence: only h @ W_hh + one tanh slab + FMAs per step ----
    def step(t, carry):
        h, c = carry
        gates = gx_sc[t] + jnp.dot(h, whh_ref[...],
                                   preferred_element_type=jnp.float32)
        # single tanh over the whole (i,f,o,g) slab; per-lane affine turns the
        # i/f/o lanes into sigmoid(z) = 0.5*tanh(z/2)+0.5 (z/2 folded in weights)
        act = jnp.tanh(gates) * pscale + pbias
        i_g = act[:, 0 * H:1 * H]
        f_g = act[:, 1 * H:2 * H]
        o_g = act[:, 2 * H:3 * H]
        g_g = act[:, 3 * H:4 * H]
        c_new = f_g * c + i_g * g_g
        h_new = o_g * jnp.tanh(c_new)
        return (h_new, c_new)

    h0 = jnp.zeros((Bp, H), jnp.float32)
    c0 = jnp.zeros((Bp, H), jnp.float32)
    # T=8: full unroll keeps one big basic block; cap (e.g. unroll=4) if T grows.
    h, _ = lax.fori_loop(0, T, step, (h0, c0), unroll=True)

    # ---- fc on final hidden state, sigmoid * 2 (lane-dense Cp=128 store) ----
    logits = (jnp.dot(h, fcw_ref[...], preferred_element_type=jnp.float32)
              + fcb_ref[...])
    out_ref[...] = (jax.nn.sigmoid(logits) * 2.0).astype(out_ref.dtype)


def prepare_params(w_ih, w_hh, b, fc_w, fc_b):
    """One-time weight packing (call once, outside the per-step forward path).

    Inputs use PyTorch gate order (i, f, g, o) along columns and are already
    transposed for x @ W:  w_ih (I,4H), w_hh (H,4H), b (4H,), fc_w (H,C), fc_b (C,).
    Packing: reorder gates to (i, f, o, g), fold the 0.5 tanh-form-sigmoid
    pre-scale into the i/f/o columns, pad I->multiple of 8 and C->multiple of 128.
    """
    I, H4 = w_ih.shape
    H = H4 // 4
    C = fc_w.shape[1]
    assert H % SUB == 0 and (4 * H) % LANE == 0, "H=64 expected (lane-aligned 4H)"
    Ip = _round_up(I, SUB)
    Cp = _round_up(C, LANE)

    def reorder_and_prescale(w):
        i, f, g, o = (w[:, k * H:(k + 1) * H] for k in range(4))
        return jnp.concatenate([0.5 * i, 0.5 * f, 0.5 * o, g], axis=1)  # (rows,4H)

    wih_p = _pad_to(reorder_and_prescale(w_ih), Ip, 0)               # (Ip, 4H)
    whh_p = reorder_and_prescale(w_hh)                               # (H, 4H)
    b_p = reorder_and_prescale(b.reshape(1, 4 * H))                  # (1, 4H)
    pscale = jnp.concatenate([jnp.full((1, 3 * H), 0.5, jnp.float32),
                              jnp.ones((1, H), jnp.float32)], axis=1)
    pbias = jnp.concatenate([jnp.full((1, 3 * H), 0.5, jnp.float32),
                             jnp.zeros((1, H), jnp.float32)], axis=1)
    fcw_p = _pad_to(fc_w, Cp, 1)                                     # (H, Cp)
    fcb_p = _pad_to(fc_b.reshape(1, C), Cp, 1)                       # (1, Cp)

    return dict(wih=wih_p, whh=whh_p, b=b_p, pscale=pscale, pbias=pbias,
                fcw=fcw_p, fcb=fcb_p, I=I, Ip=Ip, H=H, C=C, Cp=Cp)


def lstm_forward(x, params):
    """x: (B, T, I) float32.  params: output of prepare_params.
    Returns (B, 1, C) like the PyTorch module."""
    B, T, I = x.shape
    H, C = params["H"], params["C"]
    Ip, Cp = params["Ip"], params["Cp"]
    Bp = _round_up(B, SUB)

    # time-major, zero-pad batch (sublane) and input feature (lane) dims, flatten
    x_t = jnp.transpose(x, (1, 0, 2))                    # (T, B, I)
    x_p = _pad_to(_pad_to(x_t, Bp, 1), Ip, 2)            # (T, Bp, Ip)
    x_flat = x_p.reshape(T * Bp, Ip)                     # (T*Bp, Ip)

    vmem = pl.BlockSpec(memory_space=pltpu.MemorySpace.VMEM)
    out = pl.pallas_call(
        lstm_kernel,
        out_shape=jax.ShapeDtypeStruct((Bp, Cp), jnp.float32),
        in_specs=[vmem] * 8,
        out_specs=vmem,
        scratch_shapes=[pltpu.VMEM((T, Bp, 4 * H), jnp.float32)],
    )(x_flat, params["wih"], params["whh"], params["b"],
      params["pscale"], params["pbias"], params["fcw"], params["fcb"])

    return out[:B, :C][:, None, :]                       # (B, 1, C)


def lstm_reference(x, w_ih, w_hh, b, fc_w, fc_b):
    """Pure-JAX reference (unpadded, PyTorch gate order) for correctness."""
    B, T, I = x.shape
    H = w_hh.shape[0]

    def step(carry, x_t):
        h, c = carry
        gates = x_t @ w_ih + h @ w_hh + b
        i = jax.nn.sigmoid(gates[:, 0 * H:1 * H])
        f = jax.nn.sigmoid(gates[:, 1 * H:2 * H])
        g = jnp.tanh(gates[:, 2 * H:3 * H])
        o = jax.nn.sigmoid(gates[:, 3 * H:4 * H])
        c = f * c + i * g
        h = o * jnp.tanh(c)
        return (h, c), None

    h0 = jnp.zeros((B, H), jnp.float32)
    c0 = jnp.zeros((B, H), jnp.float32)
    (h, _), _ = jax.lax.scan(step, (h0, c0), jnp.transpose(x, (1, 0, 2)))
    out = jax.nn.sigmoid(h @ fc_w + fc_b) * 2.0
    return out[:, None, :]


if __name__ == "__main__":
    # Module hyperparameters (from LSTM.__init__ defaults)
    num_classes, input_size, hidden_size = 20, 6, 64
    B, T = 2, 8

    key = jax.random.PRNGKey(0)
    ks = jax.random.split(key, 7)
    bound = 1.0 / jnp.sqrt(hidden_size)

    # PyTorch stores (4H, I)/(4H, H); we keep them transposed for x @ W.
    w_ih = jax.random.uniform(ks[0], (input_size, 4 * hidden_size),
                              jnp.float32, -bound, bound)
    w_hh = jax.random.uniform(ks[1], (hidden_size, 4 * hidden_size),
                              jnp.float32, -bound, bound)
    b_ih = jax.random.uniform(ks[2], (4 * hidden_size,), jnp.float32, -bound, bound)
    b_hh = jax.random.uniform(ks[3], (4 * hidden_size,), jnp.float32, -bound, bound)
    b = b_ih + b_hh                                              # (4H,)
    fc_w = jax.random.uniform(ks[4], (hidden_size, num_classes),
                              jnp.float32, -bound, bound)
    fc_b = jax.random.uniform(ks[5], (num_classes,), jnp.float32, -bound, bound)

    x = jax.random.normal(ks[6], (B, T, input_size), jnp.float32)

    # One-time weight packing (hoisted out of the per-call forward path).
    params = prepare_params(w_ih, w_hh, b, fc_w, fc_b)
    params = jax.tree_util.tree_map(
        lambda a: jax.block_until_ready(a) if isinstance(a, jnp.ndarray) else a,
        params)

    out = jax.block_until_ready(lstm_forward(x, params))
    ref = jax.block_until_ready(lstm_reference(x, w_ih, w_hh, b, fc_w, fc_b))

    assert out.shape == (B, 1, num_classes), out.shape
    # f32 path; tanh-form sigmoid matches exp-form to ~1e-6 at these magnitudes.
    assert jnp.allclose(out, ref, atol=1e-4, rtol=1e-4), \
        float(jnp.max(jnp.abs(out - ref)))
    # NOTE: nn.LSTM dropout=0.5 is a no-op for num_layers=1 (no inter-layer dropout).
    print("KERNEL_OK")
</pallas_src>

<mosaic_0001>
module attributes {stable_mosaic.version = 11 : i64} {
  func.func @lstm_kernel(%arg0: memref<64x8xf32, #tpu.memory_space<vmem>>, %arg1: memref<8x256xf32, #tpu.memory_space<vmem>>, %arg2: memref<64x256xf32, #tpu.memory_space<vmem>>, %arg3: memref<1x256xf32, #tpu.memory_space<vmem>>, %arg4: memref<1x256xf32, #tpu.memory_space<vmem>>, %arg5: memref<1x256xf32, #tpu.memory_space<vmem>>, %arg6: memref<64x128xf32, #tpu.memory_space<vmem>>, %arg7: memref<1x128xf32, #tpu.memory_space<vmem>>, %arg8: memref<8x128xf32, #tpu.memory_space<vmem>>, %arg9: memref<8x8x256xf32, #tpu.memory_space<vmem>>) attributes {dimension_semantics = [], scalar_prefetch = 0 : i64, scratch_operands = 1 : i64, tpu.core_type = #tpu.core_type<tc>} {
    %c0 = arith.constant 0 : index
    %c0_0 = arith.constant 0 : index
    %0 = vector.load %arg0[%c0, %c0_0] : memref<64x8xf32, #tpu.memory_space<vmem>>, vector<64x8xf32>
    %c0_1 = arith.constant 0 : index
    %c0_2 = arith.constant 0 : index
    %1 = vector.load %arg1[%c0_1, %c0_2] : memref<8x256xf32, #tpu.memory_space<vmem>>, vector<8x256xf32>
    %cst = arith.constant dense<0.000000e+00> : vector<64x256xf32>
    %2 = tpu.matmul %0, %1, %cst {dimension_numbers = #tpu.dot_dimension_numbers<[1], [0], [0], [1], [0, 0, 1, 1], [], []>} : vector<64x8xf32>, vector<8x256xf32>, vector<64x256xf32> -> vector<64x256xf32>
    %c0_3 = arith.constant 0 : index
    %c0_4 = arith.constant 0 : index
    %3 = vector.load %arg3[%c0_3, %c0_4] : memref<1x256xf32, #tpu.memory_space<vmem>>, vector<1x256xf32>
    %4 = vector.broadcast %3 : vector<1x256xf32> to vector<64x256xf32>
    %5 = arith.addf %2, %4 : vector<64x256xf32>
    %6 = vector.shape_cast %5 : vector<64x256xf32> to vector<8x8x256xf32>
    %c0_5 = arith.constant 0 : index
    %c0_6 = arith.constant 0 : index
    %c0_7 = arith.constant 0 : index
    %7 = vector.load %arg9[%c0_5, %c0_6, %c0_7] : memref<8x8x256xf32, #tpu.memory_space<vmem>>, vector<8x8x256xf32>
    tpu.vector_store %arg9[%c0_5, %c0_6, %c0_7], %6 {strides = array<i32>} : memref<8x8x256xf32, #tpu.memory_space<vmem>>, vector<8x8x256xf32>,
    %c0_8 = arith.constant 0 : index
    %c0_9 = arith.constant 0 : index
    %8 = vector.load %arg4[%c0_8, %c0_9] : memref<1x256xf32, #tpu.memory_space<vmem>>, vector<1x256xf32>
    %c0_10 = arith.constant 0 : index
    %c0_11 = arith.constant 0 : index
    %9 = vector.load %arg5[%c0_10, %c0_11] : memref<1x256xf32, #tpu.memory_space<vmem>>, vector<1x256xf32>
    %cst_12 = arith.constant 0.000000e+00 : f32
    %10 = vector.broadcast %cst_12 : f32 to vector<8x64xf32>
    %cst_13 = arith.constant 0.000000e+00 : f32
    %11 = vector.broadcast %cst_13 : f32 to vector<8x64xf32>
    %c0_i32 = arith.constant 0 : i32
    %12 = arith.index_cast %c0_i32 : i32 to index
    %c0_14 = arith.constant 0 : index
    %c0_15 = arith.constant 0 : index
    %13 = vector.load %arg9[%12, %c0_14, %c0_15] : memref<8x8x256xf32, #tpu.memory_space<vmem>>, vector<1x8x256xf32>
    %14 = vector.shape_cast %13 : vector<1x8x256xf32> to vector<8x256xf32>
    %c0_16 = arith.constant 0 : index
    %c0_17 = arith.constant 0 : index
    %15 = vector.load %arg2[%c0_16, %c0_17] : memref<64x256xf32, #tpu.memory_space<vmem>>, vector<64x256xf32>
    %cst_18 = arith.constant dense<0.000000e+00> : vector<8x256xf32>
    %16 = tpu.matmul %10, %15, %cst_18 {dimension_numbers = #tpu.dot_dimension_numbers<[1], [0], [0], [1], [0, 0, 1, 1], [], []>} : vector<8x64xf32>, vector<64x256xf32>, vector<8x256xf32> -> vector<8x256xf32>
    %17 = arith.addf %14, %16 : vector<8x256xf32>
    %18 = math.tanh %17 : vector<8x256xf32>
    %19 = vector.broadcast %8 : vector<1x256xf32> to vector<8x256xf32>
    %20 = arith.mulf %18, %19 : vector<8x256xf32>
    %21 = vector.broadcast %9 : vector<1x256xf32> to vector<8x256xf32>
    %22 = arith.addf %20, %21 : vector<8x256xf32>
    %23 = vector.extract_strided_slice %22 {offsets = [0, 0], sizes = [8, 64], strides = [1, 1]} : vector<8x256xf32> to vector<8x64xf32>
    %24 = vector.extract_strided_slice %22 {offsets = [0, 64], sizes = [8, 64], strides = [1, 1]} : vector<8x256xf32> to vector<8x64xf32>
    %25 = vector.extract_strided_slice %22 {offsets = [0, 128], sizes = [8, 64], strides = [1, 1]} : vector<8x256xf32> to vector<8x64xf32>
    %26 = vector.extract_strided_slice %22 {offsets = [0, 192], sizes = [8, 64], strides = [1, 1]} : vector<8x256xf32> to vector<8x64xf32>
    %27 = arith.mulf %24, %11 : vector<8x64xf32>
    %28 = arith.mulf %23, %26 : vector<8x64xf32>
    %29 = arith.addf %27, %28 : vector<8x64xf32>
    %30 = math.tanh %29 : vector<8x64xf32>
    %31 = arith.mulf %25, %30 : vector<8x64xf32>
    %c1_i32 = arith.constant 1 : i32
    %32 = arith.index_cast %c1_i32 : i32 to index
    %c0_19 = arith.constant 0 : index
    %c0_20 = arith.constant 0 : index
    %33 = vector.load %arg9[%32, %c0_19, %c0_20] : memref<8x8x256xf32, #tpu.memory_space<vmem>>, vector<1x8x256xf32>
    %34 = vector.shape_cast %33 : vector<1x8x256xf32> to vector<8x256xf32>
    %c0_21 = arith.constant 0 : index
    %c0_22 = arith.constant 0 : index
    %35 = vector.load %arg2[%c0_21, %c0_22] : memref<64x256xf32, #tpu.memory_space<vmem>>, vector<64x256xf32>
    %cst_23 = arith.constant dense<0.000000e+00> : vector<8x256xf32>
    %36 = tpu.matmul %31, %35, %cst_23 {dimension_numbers = #tpu.dot_dimension_numbers<[1], [0], [0], [1], [0, 0, 1, 1], [], []>} : vector<8x64xf32>, vector<64x256xf32>, vector<8x256xf32> -> vector<8x256xf32>
    %37 = arith.addf %34, %36 : vector<8x256xf32>
    %38 = math.tanh %37 : vector<8x256xf32>
    %39 = vector.broadcast %8 : vector<1x256xf32> to vector<8x256xf32>
    %40 = arith.mulf %38, %39 : vector<8x256xf32>
    %41 = vector.broadcast %9 : vector<1x256xf32> to vector<8x256xf32>
    %42 = arith.addf %40, %41 : vector<8x256xf32>
    %43 = vector.extract_strided_slice %42 {offsets = [0, 0], sizes = [8, 64], strides = [1, 1]} : vector<8x256xf32> to vector<8x64xf32>
    %44 = vector.extract_strided_slice %42 {offsets = [0, 64], sizes = [8, 64], strides = [1, 1]} : vector<8x256xf32> to vector<8x64xf32>
    %45 = vector.extract_strided_slice %42 {offsets = [0, 128], sizes = [8, 64], strides = [1, 1]} : vector<8x256xf32> to vector<8x64xf32>
    %46 = vector.extract_strided_slice %42 {offsets = [0, 192], sizes = [8, 64], strides = [1, 1]} : vector<8x256xf32> to vector<8x64xf32>
    %47 = arith.mulf %44, %29 : vector<8x64xf32>
    %48 = arith.mulf %43, %46 : vector<8x64xf32>
    %49 = arith.addf %47, %48 : vector<8x64xf32>
    %50 = math.tanh %49 : vector<8x64xf32>
    %51 = arith.mulf %45, %50 : vector<8x64xf32>
    %c2_i32 = arith.constant 2 : i32
    %52 = arith.index_cast %c2_i32 : i32 to index
    %c0_24 = arith.constant 0 : index
    %c0_25 = arith.constant 0 : index
    %53 = vector.load %arg9[%52, %c0_24, %c0_25] : memref<8x8x256xf32, #tpu.memory_space<vmem>>, vector<1x8x256xf32>
    %54 = vector.shape_cast %53 : vector<1x8x256xf32> to vector<8x256xf32>
    %c0_26 = arith.constant 0 : index
    %c0_27 = arith.constant 0 : index
    %55 = vector.load %arg2[%c0_26, %c0_27] : memref<64x256xf32, #tpu.memory_space<vmem>>, vector<64x256xf32>
    %cst_28 = arith.constant dense<0.000000e+00> : vector<8x256xf32>
    %56 = tpu.matmul %51, %55, %cst_28 {dimension_numbers = #tpu.dot_dimension_numbers<[1], [0], [0], [1], [0, 0, 1, 1], [], []>} : vector<8x64xf32>, vector<64x256xf32>, vector<8x256xf32> -> vector<8x256xf32>
    %57 = arith.addf %54, %56 : vector<8x256xf32>
    %58 = math.tanh %57 : vector<8x256xf32>
    %59 = vector.broadcast %8 : vector<1x256xf32> to vector<8x256xf32>
    %60 = arith.mulf %58, %59 : vector<8x256xf32>
    %61 = vector.broadcast %9 : vector<1x256xf32> to vector<8x256xf32>
    %62 = arith.addf %60, %61 : vector<8x256xf32>
    %63 = vector.extract_strided_slice %62 {offsets = [0, 0], sizes = [8, 64], strides = [1, 1]} : vector<8x256xf32> to vector<8x64xf32>
    %64 = vector.extract_strided_slice %62 {offsets = [0, 64], sizes = [8, 64], strides = [1, 1]} : vector<8x256xf32> to vector<8x64xf32>
    %65 = vector.extract_strided_slice %62 {offsets = [0, 128], sizes = [8, 64], strides = [1, 1]} : vector<8x256xf32> to vector<8x64xf32>
    %66 = vector.extract_strided_slice %62 {offsets = [0, 192], sizes = [8, 64], strides = [1, 1]} : vector<8x256xf32> to vector<8x64xf32>
    %67 = arith.mulf %64, %49 : vector<8x64xf32>
    %68 = arith.mulf %63, %66 : vector<8x64xf32>
    %69 = arith.addf %67, %68 : vector<8x64xf32>
    %70 = math.tanh %69 : vector<8x64xf32>
    %71 = arith.mulf %65, %70 : vector<8x64xf32>
    %c3_i32 = arith.constant 3 : i32
    %72 = arith.index_cast %c3_i32 : i32 to index
    %c0_29 = arith.constant 0 : index
    %c0_30 = arith.constant 0 : index
    %73 = vector.load %arg9[%72, %c0_29, %c0_30] : memref<8x8x256xf32, #tpu.memory_space<vmem>>, vector<1x8x256xf32>
    %74 = vector.shape_cast %73 : vector<1x8x256xf32> to vector<8x256xf32>
    %c0_31 = arith.constant 0 : index
    %c0_32 = arith.constant 0 : index
    %75 = vector.load %arg2[%c0_31, %c0_32] : memref<64x256xf32, #tpu.memory_space<vmem>>, vector<64x256xf32>
    %cst_33 = arith.constant dense<0.000000e+00> : vector<8x256xf32>
    %76 = tpu.matmul %71, %75, %cst_33 {dimension_numbers = #tpu.dot_dimension_numbers<[1], [0], [0], [1], [0, 0, 1, 1], [], []>} : vector<8x64xf32>, vector<64x256xf32>, vector<8x256xf32> -> vector<8x256xf32>
    %77 = arith.addf %74, %76 : vector<8x256xf32>
    %78 = math.tanh %77 : vector<8x256xf32>
    %79 = vector.broadcast %8 : vector<1x256xf32> to vector<8x256xf32>
    %80 = arith.mulf %78, %79 : vector<8x256xf32>
    %81 = vector.broadcast %9 : vector<1x256xf32> to vector<8x256xf32>
    %82 = arith.addf %80, %81 : vector<8x256xf32>
    %83 = vector.extract_strided_slice %82 {offsets = [0, 0], sizes = [8, 64], strides = [1, 1]} : vector<8x256xf32> to vector<8x64xf32>
    %84 = vector.extract_strided_slice %82 {offsets = [0, 64], sizes = [8, 64], strides = [1, 1]} : vector<8x256xf32> to vector<8x64xf32>
    %85 = vector.extract_strided_slice %82 {offsets = [0, 128], sizes = [8, 64], strides = [1, 1]} : vector<8x256xf32> to vector<8x64xf32>
    %86 = vector.extract_strided_slice %82 {offsets = [0, 192], sizes = [8, 64], strides = [1, 1]} : vector<8x256xf32> to vector<8x64xf32>
    %87 = arith.mulf %84, %69 : vector<8x64xf32>
    %88 = arith.mulf %83, %86 : vector<8x64xf32>
    %89 = arith.addf %87, %88 : vector<8x64xf32>
    %90 = math.tanh %89 : vector<8x64xf32>
    %91 = arith.mulf %85, %90 : vector<8x64xf32>
    %c4_i32 = arith.constant 4 : i32
    %92 = arith.index_cast %c4_i32 : i32 to index
    %c0_34 = arith.constant 0 : index
    %c0_35 = arith.constant 0 : index
    %93 = vector.load %arg9[%92, %c0_34, %c0_35] : memref<8x8x256xf32, #tpu.memory_space<vmem>>, vector<1x8x256xf32>
    %94 = vector.shape_cast %93 : vector<1x8x256xf32> to vector<8x256xf32>
    %c0_36 = arith.constant 0 : index
    %c0_37 = arith.constant 0 : index
    %95 = vector.load %arg2[%c0_36, %c0_37] : memref<64x256xf32, #tpu.memory_space<vmem>>, vector<64x256xf32>
    %cst_38 = arith.constant dense<0.000000e+00> : vector<8x256xf32>
    %96 = tpu.matmul %91, %95, %cst_38 {dimension_numbers = #tpu.dot_dimension_numbers<[1], [0], [0], [1], [0, 0, 1, 1], [], []>} : vector<8x64xf32>, vector<64x256xf32>, vector<8x256xf32> -> vector<8x256xf32>
    %97 = arith.addf %94, %96 : vector<8x256xf32>
    %98 = math.tanh %97 : vector<8x256xf32>
    %99 = vector.broadcast %8 : vector<1x256xf32> to vector<8x256xf32>
    %100 = arith.mulf %98, %99 : vector<8x256xf32>
    %101 = vector.broadcast %9 : vector<1x256xf32> to vector<8x256xf32>
    %102 = arith.addf %100, %101 : vector<8x256xf32>
    %103 = vector.extract_strided_slice %102 {offsets = [0, 0], sizes = [8, 64], strides = [1, 1]} : vector<8x256xf32> to vector<8x64xf32>
    %104 = vector.extract_strided_slice %102 {offsets = [0, 64], sizes = [8, 64], strides = [1, 1]} : vector<8x256xf32> to vector<8x64xf32>
    %105 = vector.extract_strided_slice %102 {offsets = [0, 128], sizes = [8, 64], strides = [1, 1]} : vector<8x256xf32> to vector<8x64xf32>
    %106 = vector.extract_strided_slice %102 {offsets = [0, 192], sizes = [8, 64], strides = [1, 1]} : vector<8x256xf32> to vector<8x64xf32>
    %107 = arith.mulf %104, %89 : vector<8x64xf32>
    %108 = arith.mulf %103, %106 : vector<8x64xf32>
    %109 = arith.addf %107, %108 : vector<8x64xf32>
    %110 = math.tanh %109 : vector<8x64xf32>
    %111 = arith.mulf %105, %110 : vector<8x64xf32>
    %c5_i32 = arith.constant 5 : i32
    %112 = arith.index_cast %c5_i32 : i32 to index
    %c0_39 = arith.constant 0 : index
    %c0_40 = arith.constant 0 : index
    %113 = vector.load %arg9[%112, %c0_39, %c0_40] : memref<8x8x256xf32, #tpu.memory_space<vmem>>, vector<1x8x256xf32>
    %114 = vector.shape_cast %113 : vector<1x8x256xf32> to vector<8x256xf32>
    %c0_41 = arith.constant 0 : index
    %c0_42 = arith.constant 0 : index
    %115 = vector.load %arg2[%c0_41, %c0_42] : memref<64x256xf32, #tpu.memory_space<vmem>>, vector<64x256xf32>
    %cst_43 = arith.constant dense<0.000000e+00> : vector<8x256xf32>
    %116 = tpu.matmul %111, %115, %cst_43 {dimension_numbers = #tpu.dot_dimension_numbers<[1], [0], [0], [1], [0, 0, 1, 1], [], []>} : vector<8x64xf32>, vector<64x256xf32>, vector<8x256xf32> -> vector<8x256xf32>
    %117 = arith.addf %114, %116 : vector<8x256xf32>
    %118 = math.tanh %117 : vector<8x256xf32>
    %119 = vector.broadcast %8 : vector<1x256xf32> to vector<8x256xf32>
    %120 = arith.mulf %118, %119 : vector<8x256xf32>
    %121 = vector.broadcast %9 : vector<1x256xf32> to vector<8x256xf32>
    %122 = arith.addf %120, %121 : vector<8x256xf32>
    %123 = vector.extract_strided_slice %122 {offsets = [0, 0], sizes = [8, 64], strides = [1, 1]} : vector<8x256xf32> to vector<8x64xf32>
    %124 = vector.extract_strided_slice %122 {offsets = [0, 64], sizes = [8, 64], strides = [1, 1]} : vector<8x256xf32> to vector<8x64xf32>
    %125 = vector.extract_strided_slice %122 {offsets = [0, 128], sizes = [8, 64], strides = [1, 1]} : vector<8x256xf32> to vector<8x64xf32>
    %126 = vector.extract_strided_slice %122 {offsets = [0, 192], sizes = [8, 64], strides = [1, 1]} : vector<8x256xf32> to vector<8x64xf32>
    %127 = arith.mulf %124, %109 : vector<8x64xf32>
    %128 = arith.mulf %123, %126 : vector<8x64xf32>
    %129 = arith.addf %127, %128 : vector<8x64xf32>
    %130 = math.tanh %129 : vector<8x64xf32>
    %131 = arith.mulf %125, %130 : vector<8x64xf32>
    %c6_i32 = arith.constant 6 : i32
    %132 = arith.index_cast %c6_i32 : i32 to index
    %c0_44 = arith.constant 0 : index
    %c0_45 = arith.constant 0 : index
    %133 = vector.load %arg9[%132, %c0_44, %c0_45] : memref<8x8x256xf32, #tpu.memory_space<vmem>>, vector<1x8x256xf32>
    %134 = vector.shape_cast %133 : vector<1x8x256xf32> to vector<8x256xf32>
    %c0_46 = arith.constant 0 : index
    %c0_47 = arith.constant 0 : index
    %135 = vector.load %arg2[%c0_46, %c0_47] : memref<64x256xf32, #tpu.memory_space<vmem>>, vector<64x256xf32>
    %cst_48 = arith.constant dense<0.000000e+00> : vector<8x256xf32>
    %136 = tpu.matmul %131, %135, %cst_48 {dimension_numbers = #tpu.dot_dimension_numbers<[1], [0], [0], [1], [0, 0, 1, 1], [], []>} : vector<8x64xf32>, vector<64x256xf32>, vector<8x256xf32> -> vector<8x256xf32>
    %137 = arith.addf %134, %136 : vector<8x256xf32>
    %138 = math.tanh %137 : vector<8x256xf32>
    %139 = vector.broadcast %8 : vector<1x256xf32> to vector<8x256xf32>
    %140 = arith.mulf %138, %139 : vector<8x256xf32>
    %141 = vector.broadcast %9 : vector<1x256xf32> to vector<8x256xf32>
    %142 = arith.addf %140, %141 : vector<8x256xf32>
    %143 = vector.extract_strided_slice %142 {offsets = [0, 0], sizes = [8, 64], strides = [1, 1]} : vector<8x256xf32> to vector<8x64xf32>
    %144 = vector.extract_strided_slice %142 {offsets = [0, 64], sizes = [8, 64], strides = [1, 1]} : vector<8x256xf32> to vector<8x64xf32>
    %145 = vector.extract_strided_slice %142 {offsets = [0, 128], sizes = [8, 64], strides = [1, 1]} : vector<8x256xf32> to vector<8x64xf32>
    %146 = vector.extract_strided_slice %142 {offsets = [0, 192], sizes = [8, 64], strides = [1, 1]} : vector<8x256xf32> to vector<8x64xf32>
    %147 = arith.mulf %144, %129 : vector<8x64xf32>
    %148 = arith.mulf %143, %146 : vector<8x64xf32>
    %149 = arith.addf %147, %148 : vector<8x64xf32>
    %150 = math.tanh %149 : vector<8x64xf32>
    %151 = arith.mulf %145, %150 : vector<8x64xf32>
    %c7_i32 = arith.constant 7 : i32
    %152 = arith.index_cast %c7_i32 : i32 to index
    %c0_49 = arith.constant 0 : index
    %c0_50 = arith.constant 0 : index
    %153 = vector.load %arg9[%152, %c0_49, %c0_50] : memref<8x8x256xf32, #tpu.memory_space<vmem>>, vector<1x8x256xf32>
    %154 = vector.shape_cast %153 : vector<1x8x256xf32> to vector<8x256xf32>
    %c0_51 = arith.constant 0 : index
    %c0_52 = arith.constant 0 : index
    %155 = vector.load %arg2[%c0_51, %c0_52] : memref<64x256xf32, #tpu.memory_space<vmem>>, vector<64x256xf32>
    %cst_53 = arith.constant dense<0.000000e+00> : vector<8x256xf32>
    %156 = tpu.matmul %151, %155, %cst_53 {dimension_numbers = #tpu.dot_dimension_numbers<[1], [0], [0], [1], [0, 0, 1, 1], [], []>} : vector<8x64xf32>, vector<64x256xf32>, vector<8x256xf32> -> vector<8x256xf32>
    %157 = arith.addf %154, %156 : vector<8x256xf32>
    %158 = math.tanh %157 : vector<8x256xf32>
    %159 = vector.broadcast %8 : vector<1x256xf32> to vector<8x256xf32>
    %160 = arith.mulf %158, %159 : vector<8x256xf32>
    %161 = vector.broadcast %9 : vector<1x256xf32> to vector<8x256xf32>
    %162 = arith.addf %160, %161 : vector<8x256xf32>
    %163 = vector.extract_strided_slice %162 {offsets = [0, 0], sizes = [8, 64], strides = [1, 1]} : vector<8x256xf32> to vector<8x64xf32>
    %164 = vector.extract_strided_slice %162 {offsets = [0, 64], sizes = [8, 64], strides = [1, 1]} : vector<8x256xf32> to vector<8x64xf32>
    %165 = vector.extract_strided_slice %162 {offsets = [0, 128], sizes = [8, 64], strides = [1, 1]} : vector<8x256xf32> to vector<8x64xf32>
    %166 = vector.extract_strided_slice %162 {offsets = [0, 192], sizes = [8, 64], strides = [1, 1]} : vector<8x256xf32> to vector<8x64xf32>
    %167 = arith.mulf %164, %149 : vector<8x64xf32>
    %168 = arith.mulf %163, %166 : vector<8x64xf32>
    %169 = arith.addf %167, %168 : vector<8x64xf32>
    %170 = math.tanh %169 : vector<8x64xf32>
    %171 = arith.mulf %165, %170 : vector<8x64xf32>
    %c8_i32 = arith.constant 8 : i32
    %c0_54 = arith.constant 0 : index
    %c0_55 = arith.constant 0 : index
    %172 = vector.load %arg6[%c0_54, %c0_55] : memref<64x128xf32, #tpu.memory_space<vmem>>, vector<64x128xf32>
    %cst_56 = arith.constant dense<0.000000e+00> : vector<8x128xf32>
    %173 = tpu.matmul %171, %172, %cst_56 {dimension_numbers = #tpu.dot_dimension_numbers<[1], [0], [0], [1], [0, 0, 1, 1], [], []>} : vector<8x64xf32>, vector<64x128xf32>, vector<8x128xf32> -> vector<8x128xf32>
    %c0_57 = arith.constant 0 : index
    %c0_58 = arith.constant 0 : index
    %174 = vector.load %arg7[%c0_57, %c0_58] : memref<1x128xf32, #tpu.memory_space<vmem>>, vector<1x128xf32>
    %175 = vector.broadcast %174 : vector<1x128xf32> to vector<8x128xf32>
    %176 = arith.addf %173, %175 : vector<8x128xf32>
    %177 = arith.negf %176 : vector<8x128xf32>
    %178 = math.exp %177 : vector<8x128xf32>
    %cst_59 = arith.constant 1.000000e+00 : f32
    %179 = vector.broadcast %cst_59 : f32 to vector<8x128xf32>
    %180 = arith.addf %179, %178 : vector<8x128xf32>
    %181 = arith.divf %179, %180 : vector<8x128xf32>
    %cst_60 = arith.constant 2.000000e+00 : f32
    %182 = vector.broadcast %cst_60 : f32 to vector<8x128xf32>
    %183 = arith.mulf %181, %182 : vector<8x128xf32>
    %c0_61 = arith.constant 0 : index
    %c0_62 = arith.constant 0 : index
    %184 = vector.load %arg8[%c0_61, %c0_62] : memref<8x128xf32, #tpu.memory_space<vmem>>, vector<8x128xf32>
    tpu.vector_store %arg8[%c0_61, %c0_62], %183 {strides = array<i32>} : memref<8x128xf32, #tpu.memory_space<vmem>>, vector<8x128xf32>,
    return
  }
}

</mosaic_0001>

<bundles_post_ra>
// kernel: tpu_custom_call.1
= control target key start
LH: loop header
LB: loop body
LE: loop exit
PB: predicated region body
PF: predicated region fallthrough
CT: control target
= control target key end

     0   :  { %13 = vsyncpa [#allocation4], 0  ;;  %s1844_s0 = inlined_call_operand.vmem [shape: f32[64,8], index: 0, kind: input, shape index: {}]   ;;  %s1845_s1 = inlined_call_operand.vmem [shape: f32[8,256], index: 1, kind: input, shape index: {}]   ;;  %s1846_s2 = inlined_call_operand.hbm [shape: f32[64,256], index: 2, kind: input, shape index: {}]   ;;  %s1847_s3 = inlined_call_operand.vmem [shape: f32[1,256], index: 3, kind: input, shape index: {}]   ;;  %s1848_s4 = inlined_call_operand.hbm [shape: f32[1,256], index: 4, kind: input, shape index: {}]   ;;  %s1849_s5 = inlined_call_operand.hbm [shape: f32[1,256], index: 5, kind: input, shape index: {}]   ;;  %s1850_s6 = inlined_call_operand.vmem [shape: f32[64,128], index: 6, kind: input, shape index: {}]   ;;  %s1851_s7 = inlined_call_operand.vmem [shape: f32[1,128], index: 7, kind: input, shape index: {}]   ;;  %s1852_s8 = inlined_call_operand.hbm [shape: f32[8,128], index: 8, kind: output, shape index: {}]  }
   0x1   :  { %14 = vsyncpa [#allocation7], 0 }
   0x2   :  { %15 = vsyncpa [#allocation5], 0  ;;  %s1404_s27 = smov [#allocation6]   ;;  %s1405_s29 = smov [#allocation3]  }
   0x3   :  { %s40_s28 = sshll.u32 %s1404_s27, 4  ;;  %s25_s30 = sshll.u32 %s1405_s29, 4  ;;  %s41_s28 = int_to_ptr.vmem [resolvable:$true] %s40_s28  ;;  %s26_s30 = int_to_ptr.vmem [resolvable:$true] %s25_s30 }
   0x4   :  { %s1326_s9 = scalar_lea.vmem %s41_s28, 32  ;;  %p1331_p1 = scmp.lt.s32.totalorder %s41_s28, %s41_s28 }
   0x5   :  { %p1327_p0 = scmp.ne.s32.totalorder %s41_s28, %s1326_s9  ;;  %p1332_p2 = scmp.lt.s32.totalorder %s1326_s9, %s1326_s9 }
   0x7   :  { %p1333_p3 = por %p1332_p2, %p1331_p1 }
   0x9   :  { %p1334_p4 = pnand %p1333_p3, %p1327_p0 }
   0xb   :  { %1337 = shalt.err (!%p1334_p4)
}
   0xc   :  { %43 = dma.hbm_to_vmem [thread:$0]  %s1848_s4, 32, %s41_s28, [#allocation7]  }
   0xd   :  { %s1346_s12 = scalar_lea.vmem %s26_s30, 2048  ;;  %p1351_p6 = scmp.lt.s32.totalorder %s26_s30, %s26_s30 }
   0xe   :  { %p1347_p5 = scmp.ne.s32.totalorder %s26_s30, %s1346_s12  ;;  %p1352_p7 = scmp.lt.s32.totalorder %s1346_s12, %s1346_s12 }
  0x10   :  { %p1353_p8 = por %p1352_p7, %p1351_p6 }
  0x12   :  { %p1354_p9 = pnand %p1353_p8, %p1347_p5 }
  0x14   :  { %1357 = shalt.err (!%p1354_p9)
}
  0x15   :  { %s1406_s13 = smov 256   ;;  %s1407_s14 = smov 16  }
  0x16   :  { %31 = dma.hbm_to_vmem [thread:$0]  %s1846_s2, 2048, %s26_s30, [#allocation4], %s1406_s13, %s1406_s13, %s1407_s14  }
  0x17   :  { %s1408_s17 = smov [#allocation8]  }
  0x18   :  { %s50_s18 = sshll.u32 %s1408_s17, 4  ;;  %s51_s18 = int_to_ptr.vmem [resolvable:$true] %s50_s18 }
  0x19   :  { %s1366_s19 = scalar_lea.vmem %s51_s18, 32  ;;  %p1371_p11 = scmp.lt.s32.totalorder %s51_s18, %s51_s18 }
  0x1a   :  { %p1367_p10 = scmp.ne.s32.totalorder %s51_s18, %s1366_s19  ;;  %p1372_p12 = scmp.lt.s32.totalorder %s1366_s19, %s1366_s19 }
  0x1c   :  { %p1373_p13 = por %p1372_p12, %p1371_p11 }
  0x1e   :  { %p1374_p0 = pnand %p1373_p13, %p1367_p10 }
  0x20   :  { %1377 = shalt.err (!%p1374_p0)
}
  0x21   :  { %53 = dma.hbm_to_vmem [thread:$0]  %s1849_s5, 32, %s51_s18, [#allocation7]  }
  0x22   :  { %1398 = dma.done.wait [#allocation4], 2048  }
  0x23   :  { %1399 = vsyncadd [#allocation4], 4294965248 }
  0x24   :  { %1400 = dma.done.wait [#allocation7], 64  }
  0x25   :  { %1401 = vsyncadd [#allocation7], 4294967232  ;;  %v1409_v0 = vmov 0.0   ;;  %v1469_v1 = vld [vmem:[#allocation3 + $0x78] sm:$0xff]  ;;  %v1471_v2 = vld [vmem:[#allocation3 + $0x70] sm:$0xff]  ;;  %vm89_vm0 = vcmask 64512   ;;  %v79_v20 = vlaneseq }
  0x26   :  { %178 = vmatprep.mubr.f32.mxu0 %v1409_v0  ;;  %331 = vmatprep.mubr.f32.mxu1 %v1409_v0  ;;  %v1473_v3 = vld [vmem:[#allocation3 + $0x68] sm:$0xff]  ;;  %v1476_v4 = vld [vmem:[#allocation3 + $0x60] sm:$0xff]  ;;  %v1479_v5 = vld [vmem:[#allocation3 + $0x58] sm:$0xff]  ;;  %vm263_vm1 = vcmask 523264   ;;  %vm1411_vm2 = vmmov 0  }
  0x27   :  { %283 = vmatprep.subr.mxu1 %v1469_v1  ;;  %v1482_v6 = vld [vmem:[#allocation3 + $0x50] sm:$0xff]  ;;  %v76_v7 = vld [vmem:[%s1845_s1 + $0x8] sm:$0xff]  ;;  %v75_v9 = vld [vmem:[%s1845_s1] sm:$0xff]  ;;  %v80_v21 = vshrl.u32 %v79_v20, 7 }
  0x28   :  { %284 = vmatpush1.msra.mxu1 %v1471_v2  ;;  %v1488_v8 = vld [vmem:[#allocation3 + $0x48] sm:$0xff]  ;;  %144 = vmatprep.subr.mxu0 %v76_v7  ;;  %v67_v10 = vld [vmem:[%s1844_s0] sm:$0xff]  ;;  %v1500_v12 = vld [vmem:[#allocation3 + $0x38] sm:$0xff] }
  0x29   :  { %285 = vmatprep.subr.mxu1 %v1473_v3  ;;  %v1497_v11 = vld [vmem:[#allocation3 + $0x40] sm:$0xff]  ;;  %145 = vmatpush1.msra.mxu0 %v75_v9  ;;  %v1504_v13 = vld [vmem:[#allocation3 + $0x30] sm:$0xff]  ;;  %v1508_v14 = vld [vmem:[#allocation3 + $0x28] sm:$0xff]  ;;  %v81_v22 = vsub.s32 0, %v80_v21  ;;  %v85_v25 = vsub.s32 1, %v80_v21 }
  0x2a   :  { %286 = vmatpush1.msra.mxu1 %v1476_v4  ;;  %1211 = vmatmul.mubr.msk.f32.vlgmr.msra.gmra.mxu0 %vm89_vm0, %v67_v10  ;;  %v1512_v15 = vld [vmem:[#allocation3 + $0x20] sm:$0xff]  ;;  %v1516_v16 = vld [vmem:[#allocation3 + $0x18] sm:$0xff]  ;;  %v1520_v17 = vld [vmem:[#allocation3 + $0x10] sm:$0xff] }
  0x2b   :  { %287 = vmatprep.subr.mxu1 %v1479_v5  ;;  %184 = vmatprep.mubr.f32.mxu0 %v1409_v0  ;;  %v1524_v18 = vld [vmem:[#allocation3 + $0x8] sm:$0xff]  ;;  %v1528_v19 = vld [vmem:[#allocation3] sm:$0xff] }
  0x2c   :  { %288 = vmatpush1.msra.mxu1 %v1482_v6  ;;  %509 = vmatprep.subr.mxu0 %v1469_v1  ;;  %v77_v23 = vld [vmem:[%s1847_s3] sm:$0x3]  ;;  %v244_v37 = vld [vmem:[#allocation8] sm:$0x3]  ;;  %s1410_s3 = smov 64   ;;  %v68_v49 = vld [vmem:[%s1844_s0 + $0x8] sm:$0xff] }
  0x2d   :  { %289 = vmatprep.subr.mxu1 %v1488_v8  ;;  %510 = vmatpush1.msra.mxu0 %v1471_v2  ;;  %v1567_v24 = vrot.slane %v77_v23, %v81_v22  ;;  %v1570_v28 = vrot.slane %v77_v23, %v85_v25  ;;  %v243_v35 = vld [vmem:[#allocation6] sm:$0x3]  ;;  %v1575_v38 = vrot.slane %v244_v37, %v85_v25 }
  0x2e   :  { %290 = vmatpush1.msra.mxu1 %v1497_v11  ;;  %511 = vmatprep.subr.mxu0 %v1473_v3  ;;  %v1573_v36 = vrot.slane %v243_v35, %v85_v25  ;;  %v1580_v42 = vrot.slane %v243_v35, %v81_v22  ;;  %v1582_v44 = vrot.slane %v244_v37, %v81_v22 }
  0x2f   :  { %291 = vmatprep.subr.mxu1 %v1500_v12  ;;  %512 = vmatpush1.msra.mxu0 %v1476_v4 }
  0x30   :  { %292 = vmatpush1.msra.mxu1 %v1504_v13  ;;  %513 = vmatprep.subr.mxu0 %v1479_v5 }
  0x31   :  { %293 = vmatprep.subr.mxu1 %v1508_v14  ;;  %514 = vmatpush1.msra.mxu0 %v1482_v6 }
  0x32   :  { %294 = vmatpush1.msra.mxu1 %v1512_v15  ;;  %515 = vmatprep.subr.mxu0 %v1488_v8 }
  0x33   :  { %295 = vmatprep.subr.mxu1 %v1516_v16  ;;  %516 = vmatpush1.msra.mxu0 %v1497_v11 }
  0x34   :  { %296 = vmatpush1.msra.mxu1 %v1520_v17  ;;  %517 = vmatprep.subr.mxu0 %v1500_v12 }
  0x35   :  { %297 = vmatprep.subr.mxu1 %v1524_v18  ;;  %518 = vmatpush1.msra.mxu0 %v1504_v13 }
  0x36   :  { %298 = vmatpush1.msra.mxu1 %v1528_v19  ;;  %519 = vmatprep.subr.mxu0 %v1508_v14 }
  0x37   :  { %332 = vmatmul.mubr.f32.vlgmr.msra.gmra.mxu1 %v1409_v0  ;;  %407 = vmatprep.subr.mxu1 %v1469_v1 }
  0x38   :  { %408 = vmatpush1.msra.mxu1 %v1471_v2  ;;  %455 = vmatprep.mubr.f32.mxu1 %v1409_v0 }
  0x39   :  { %409 = vmatprep.subr.mxu1 %v1473_v3  ;;  %520 = vmatpush1.msra.mxu0 %v1512_v15 }
  0x3a   :  { %410 = vmatpush1.msra.mxu1 %v1476_v4  ;;  %521 = vmatprep.subr.mxu0 %v1516_v16 }
  0x3b   :  { %411 = vmatprep.subr.mxu1 %v1479_v5  ;;  %522 = vmatpush1.msra.mxu0 %v1520_v17 }
  0x3c   :  { %412 = vmatpush1.msra.mxu1 %v1482_v6  ;;  %523 = vmatprep.subr.mxu0 %v1524_v18 }
  0x3d   :  { %413 = vmatprep.subr.mxu1 %v1488_v8  ;;  %524 = vmatpush1.msra.mxu0 %v1528_v19 }
  0x3e   :  { %414 = vmatpush1.msra.mxu1 %v1497_v11  ;;  %713 = vmatprep.subr.mxu0 %v1469_v1 }
  0x3f   :  { %415 = vmatprep.subr.mxu1 %v1500_v12  ;;  %1212 = vmatmul.mubr.msk.f32.gmra.mxu0 %vm89_vm0, %v68_v49 }
  0x40   :  { %416 = vmatpush1.msra.mxu1 %v1504_v13  ;;  %190 = vmatprep.mubr.f32.mxu0 %v1409_v0 }
  0x41   :  { %417 = vmatprep.subr.mxu1 %v1508_v14 }
  0x42   :  { %418 = vmatpush1.msra.mxu1 %v1512_v15 }
  0x43   :  { %419 = vmatprep.subr.mxu1 %v1516_v16 }
  0x44   :  { %420 = vmatpush1.msra.mxu1 %v1520_v17 }
  0x45   :  { %421 = vmatprep.subr.mxu1 %v1524_v18 }
  0x46   :  { %422 = vmatpush1.msra.mxu1 %v1528_v19 }
  0x47   :  { %611 = vmatprep.subr.mxu1 %v1469_v1 }
  0xea   :  { %v180_v26 = vpop.f32.mrf.mxu0 }
  0xeb   :  { %v181_v27 = vadd.f32 %v180_v26, %v1567_v24  ;;  %v69_v26 = vld [vmem:[%s1844_s0 + $0x10] sm:$0xff] }
  0xec   :  { %v182_v29 = vpop.f32.mrf.mxu0  ;;  %1213 = vmatmul.mubr.msk.f32.gmra.mxu0 %vm89_vm0, %v69_v26 }
  0xed   :  { %v183_v31 = vadd.f32 %v182_v29, %v1570_v28  ;;  %196 = vmatprep.mubr.f32.mxu0 %v1409_v0  ;;  %v71_v29 = vld [vmem:[%s1844_s0 + $0x20] sm:$0xff] }
  0xf7   :  { %v333_v30 = vpop.f32.mrf.mxu1 }
  0xf8   :  { %v338_v32 = vadd.f32 %v333_v30, %v181_v27  ;;  %v70_v27 = vld [vmem:[%s1844_s0 + $0x18] sm:$0xff]  ;;  %v72_v30 = vld [vmem:[%s1844_s0 + $0x28] sm:$0xff] }
  0xf9   :  { %v335_v33 = vpop.f32.mrf.mxu1  ;;  %1214 = vmatmul.mubr.msk.f32.gmra.mxu0 %vm89_vm0, %v70_v27 }
  0xfa   :  { %v339_v34 = vadd.f32 %v335_v33, %v183_v31  ;;  %202 = vmatprep.mubr.f32.mxu0 %v1409_v0  ;;  %v73_v31 = vld [vmem:[%s1844_s0 + $0x30] sm:$0xff] }
  0xfc   :  { %1266 = vtanh.f32 %v339_v34 }
  0xfd   :  { %1268 = vtanh.f32 %v338_v32  ;;  %1215 = vmatmul.mubr.msk.f32.gmra.mxu0 %vm89_vm0, %v71_v29  ;;  %v74_v32 = vld [vmem:[%s1844_s0 + $0x38] sm:$0xff] }
  0xfe   :  { %208 = vmatprep.mubr.f32.mxu0 %v1409_v0 }
  0xff   :  { %v186_v56 = vpop.f32.mrf.mxu0 }
 0x100   :  { %v187_v57 = vadd.f32 %v186_v56, %v1567_v24 }
 0x101   :  { %v188_v58 = vpop.f32.mrf.mxu0  ;;  %1216 = vmatmul.mubr.msk.f32.gmra.mxu0 %vm89_vm0, %v72_v30 }
 0x102   :  { %v189_v60 = vadd.f32 %v188_v58, %v1570_v28  ;;  %214 = vmatprep.mubr.f32.mxu0 %v1409_v0 }
 0x105   :  { %1217 = vmatmul.mubr.msk.f32.gmra.mxu0 %vm89_vm0, %v73_v31 }
 0x106   :  { %220 = vmatprep.mubr.f32.mxu0 %v1409_v0 }
 0x109   :  { %v1267_v39 = vpop.eup %1266  ;;  %1218 = vmatmul.mubr.msk.f32.gmra.mxu0 %vm89_vm0, %v74_v32 }
 0x10a   :  { %v354_v40 = vmul.f32 %v1267_v39, %v1573_v36  ;;  %v1269_v43 = vpop.eup %1268  ;;  %557 = vmatprep.mubr.f32.mxu0 %v1409_v0 }
 0x10b   :  { %v353_v45 = vmul.f32 %v1269_v43, %v1580_v42 }
 0x10c   :  { %v367_v41 = vadd.f32 %v1575_v38, %v354_v40 }
 0x10d   :  { %v366_v46 = vadd.f32 %v1582_v44, %v353_v45 }
 0x10e   :  { %370 = vrot.lane.b32.xlu0 %v367_v41, %s1410_s3 }
 0x10f   :  { %v368_v50 = vmul.f32 0.0, %v366_v46 }
 0x180   :  { %v371_v47 = vpop.permute.xlu0 %370 }
 0x181   :  { %v373_v48 = vmul.f32 %v371_v47, %v366_v46 }
 0x183   :  { %375 = vrot.lane.b32.xlu0 %v373_v48, %s1410_s3 }
 0x1f5   :  { %v376_v51 = vpop.permute.xlu0 %375 }
 0x1f6   :  { %v1592_v52 = vadd.f32 %v376_v51, %v368_v50 }
 0x1f8   :  { %1270 = vtanh.f32 %v1592_v52 }
 0x205   :  { %v1271_v53 = vpop.eup %1270 }
 0x206   :  { %381 = vrot.lane.b32.xlu1 %v1271_v53, %s1410_s3 }
 0x278   :  { %v382_v54 = vpop.permute.xlu1 %381 }
 0x279   :  { %v384_v55 = vmul.f32 %v382_v54, %v367_v41  ;;  %v192_v41 = vpop.f32.mrf.mxu0 }
 0x27b   :  { %1219 = vmatmul.mubr.msk.f32.vlgmr.msra.gmra.mxu1 %vm263_vm1, %v384_v55  ;;  %v194_v43 = vpop.f32.mrf.mxu0  ;;  %v193_v55 = vadd.f32 %v192_v41, %v1567_v24 }
 0x27c   :  { %612 = vmatpush1.msra.mxu1 %v1471_v2  ;;  %659 = vmatprep.mubr.f32.mxu1 %v1409_v0 }
 0x27d   :  { %613 = vmatprep.subr.mxu1 %v1473_v3  ;;  %v198_v45 = vpop.f32.mrf.mxu0 }
 0x27e   :  { %614 = vmatpush1.msra.mxu1 %v1476_v4  ;;  %v199_v30 = vadd.f32 %v198_v45, %v1567_v24 }
 0x27f   :  { %615 = vmatprep.subr.mxu1 %v1479_v5  ;;  %v200_v46 = vpop.f32.mrf.mxu0 }
 0x280   :  { %616 = vmatpush1.msra.mxu1 %v1482_v6  ;;  %v201_v32 = vadd.f32 %v200_v46, %v1570_v28 }
 0x281   :  { %617 = vmatprep.subr.mxu1 %v1488_v8  ;;  %v1672_v47 = vpop.f32.mrf.mxu0 }
 0x282   :  { %618 = vmatpush1.msra.mxu1 %v1497_v11 }
 0x283   :  { %619 = vmatprep.subr.mxu1 %v1500_v12  ;;  %v1674_v48 = vpop.f32.mrf.mxu0 }
 0x284   :  { %620 = vmatpush1.msra.mxu1 %v1504_v13 }
 0x285   :  { %621 = vmatprep.subr.mxu1 %v1508_v14  ;;  %v1676_v49 = vpop.f32.mrf.mxu0 }
 0x286   :  { %622 = vmatpush1.msra.mxu1 %v1512_v15 }
 0x287   :  { %623 = vmatprep.subr.mxu1 %v1516_v16  ;;  %v1678_v50 = vpop.f32.mrf.mxu0 }
 0x288   :  { %624 = vmatpush1.msra.mxu1 %v1520_v17 }
 0x289   :  { %625 = vmatprep.subr.mxu1 %v1524_v18  ;;  %v1680_v51 = vpop.f32.mrf.mxu0 }
 0x28a   :  { %626 = vmatpush1.msra.mxu1 %v1528_v19 }
 0x28b   :  { %815 = vmatprep.subr.mxu1 %v1469_v1 }
 0x33b   :  { %v457_v59 = vpop.f32.mrf.mxu1 }
 0x33c   :  { %v462_v61 = vadd.f32 %v457_v59, %v187_v57  ;;  %v195_v57 = vadd.f32 %v194_v43, %v1570_v28 }
 0x33d   :  { %v459_v62 = vpop.f32.mrf.mxu1 }
 0x33e   :  { %v463_v63 = vadd.f32 %v459_v62, %v189_v60 }
 0x340   :  { %1272 = vtanh.f32 %v463_v63 }
 0x341   :  { %1274 = vtanh.f32 %v462_v61 }
 0x34d   :  { %v1273_v7 = vpop.eup %1272 }
 0x34e   :  { %v467_v9 = vmul.f32 %v1273_v7, %v1573_v36  ;;  %v1275_v20 = vpop.eup %1274 }
 0x34f   :  { %v466_v21 = vmul.f32 %v1275_v20, %v1580_v42 }
 0x350   :  { %v469_v10 = vadd.f32 %v467_v9, %v1575_v38 }
 0x351   :  { %v468_v22 = vadd.f32 %v466_v21, %v1582_v44 }
 0x352   :  { %472 = vrot.lane.b32.xlu1 %v469_v10, %s1410_s3 }
 0x353   :  { %v470_v33 = vmul.f32 %v468_v22, %v1592_v52  ;;  %v1682_v52 = vpop.f32.mrf.mxu0 }
 0x355   :  { %v1684_v53 = vpop.f32.mrf.mxu0 }
 0x357   :  { %v1686_v54 = vpop.f32.mrf.mxu0 }
 0x3c4   :  { %v473_v23 = vpop.permute.xlu1 %472 }
 0x3c5   :  { %v475_v25 = vmul.f32 %v473_v23, %v468_v22 }
 0x3c7   :  { %477 = vrot.lane.b32.xlu0 %v475_v25, %s1410_s3 }
 0x439   :  { %v478_v34 = vpop.permute.xlu0 %477 }
 0x43a   :  { %v480_v35 = vadd.f32 %v478_v34, %v470_v33 }
 0x43c   :  { %1276 = vtanh.f32 %v480_v35 }
 0x449   :  { %v1277_v37 = vpop.eup %1276 }
 0x44a   :  { %483 = vrot.lane.b32.xlu1 %v1277_v37, %s1410_s3 }
 0x4bc   :  { %v484_v39 = vpop.permute.xlu1 %483 }
 0x4bd   :  { %v486_v40 = vmul.f32 %v484_v39, %v469_v10 }
 0x4bf   :  { %1220 = vmatmul.mubr.msk.f32.vlgmr.msra.gmra.mxu0 %vm263_vm1, %v486_v40 }
 0x4c0   :  { %714 = vmatpush1.msra.mxu0 %v1471_v2  ;;  %761 = vmatprep.mubr.f32.mxu0 %v1409_v0 }
 0x4c1   :  { %715 = vmatprep.subr.mxu0 %v1473_v3 }
 0x4c2   :  { %716 = vmatpush1.msra.mxu0 %v1476_v4 }
 0x4c3   :  { %717 = vmatprep.subr.mxu0 %v1479_v5 }
 0x4c4   :  { %718 = vmatpush1.msra.mxu0 %v1482_v6 }
 0x4c5   :  { %719 = vmatprep.subr.mxu0 %v1488_v8 }
 0x4c6   :  { %720 = vmatpush1.msra.mxu0 %v1497_v11 }
 0x4c7   :  { %721 = vmatprep.subr.mxu0 %v1500_v12 }
 0x4c8   :  { %722 = vmatpush1.msra.mxu0 %v1504_v13 }
 0x4c9   :  { %723 = vmatprep.subr.mxu0 %v1508_v14 }
 0x4ca   :  { %724 = vmatpush1.msra.mxu0 %v1512_v15 }
 0x4cb   :  { %725 = vmatprep.subr.mxu0 %v1516_v16 }
 0x4cc   :  { %726 = vmatpush1.msra.mxu0 %v1520_v17 }
 0x4cd   :  { %727 = vmatprep.subr.mxu0 %v1524_v18 }
 0x4ce   :  { %728 = vmatpush1.msra.mxu0 %v1528_v19 }
 0x4cf   :  { %917 = vmatprep.subr.mxu0 %v1469_v1 }
 0x57f   :  { %v559_v56 = vpop.f32.mrf.mxu0 }
 0x580   :  { %v564_v58 = vadd.f32 %v559_v56, %v193_v55 }
 0x581   :  { %v561_v59 = vpop.f32.mrf.mxu0 }
 0x582   :  { %v565_v60 = vadd.f32 %v561_v59, %v195_v57 }
 0x584   :  { %1278 = vtanh.f32 %v565_v60 }
 0x585   :  { %1280 = vtanh.f32 %v564_v58 }
 0x591   :  { %v1279_v61 = vpop.eup %1278 }
 0x592   :  { %v569_v62 = vmul.f32 %v1279_v61, %v1573_v36  ;;  %v1281_v7 = vpop.eup %1280  ;;  %v205_v61 = vadd.f32 %v1672_v47, %v1567_v24 }
 0x593   :  { %v568_v9 = vmul.f32 %v1281_v7, %v1580_v42 }
 0x594   :  { %v571_v63 = vadd.f32 %v569_v62, %v1575_v38 }
 0x595   :  { %v570_v10 = vadd.f32 %v568_v9, %v1582_v44 }
 0x596   :  { %574 = vrot.lane.b32.xlu0 %v571_v63, %s1410_s3 }
 0x597   :  { %v572_v22 = vmul.f32 %v570_v10, %v480_v35 }
 0x608   :  { %v575_v20 = vpop.permute.xlu0 %574 }
 0x609   :  { %v577_v21 = vmul.f32 %v575_v20, %v570_v10 }
 0x60b   :  { %579 = vrot.lane.b32.xlu1 %v577_v21, %s1410_s3 }
 0x67d   :  { %v580_v23 = vpop.permute.xlu1 %579 }
 0x67e   :  { %v582_v25 = vadd.f32 %v580_v23, %v572_v22 }
 0x680   :  { %1282 = vtanh.f32 %v582_v25 }
 0x68d   :  { %v1283_v26 = vpop.eup %1282 }
 0x68e   :  { %585 = vrot.lane.b32.xlu0 %v1283_v26, %s1410_s3 }
 0x700   :  { %v586_v27 = vpop.permute.xlu0 %585 }
 0x701   :  { %v588_v29 = vmul.f32 %v586_v27, %v571_v63  ;;  %v207_v63 = vadd.f32 %v1674_v48, %v1570_v28 }
 0x703   :  { %1221 = vmatmul.mubr.msk.f32.vlgmr.msra.gmra.mxu1 %vm263_vm1, %v588_v29 }
 0x704   :  { %816 = vmatpush1.msra.mxu1 %v1471_v2  ;;  %863 = vmatprep.mubr.f32.mxu1 %v1409_v0 }
 0x705   :  { %817 = vmatprep.subr.mxu1 %v1473_v3 }
 0x706   :  { %818 = vmatpush1.msra.mxu1 %v1476_v4 }
 0x707   :  { %819 = vmatprep.subr.mxu1 %v1479_v5 }
 0x708   :  { %820 = vmatpush1.msra.mxu1 %v1482_v6 }
 0x709   :  { %821 = vmatprep.subr.mxu1 %v1488_v8 }
 0x70a   :  { %822 = vmatpush1.msra.mxu1 %v1497_v11 }
 0x70b   :  { %823 = vmatprep.subr.mxu1 %v1500_v12 }
 0x70c   :  { %824 = vmatpush1.msra.mxu1 %v1504_v13 }
 0x70d   :  { %825 = vmatprep.subr.mxu1 %v1508_v14 }
 0x70e   :  { %826 = vmatpush1.msra.mxu1 %v1512_v15 }
 0x70f   :  { %827 = vmatprep.subr.mxu1 %v1516_v16 }
 0x710   :  { %828 = vmatpush1.msra.mxu1 %v1520_v17 }
 0x711   :  { %829 = vmatprep.subr.mxu1 %v1524_v18 }
 0x712   :  { %830 = vmatpush1.msra.mxu1 %v1528_v19 }
 0x713   :  { %1019 = vmatprep.subr.mxu1 %v1469_v1 }
 0x7c3   :  { %v661_v31 = vpop.f32.mrf.mxu1 }
 0x7c4   :  { %v666_v33 = vadd.f32 %v661_v31, %v199_v30 }
 0x7c5   :  { %v663_v34 = vpop.f32.mrf.mxu1 }
 0x7c6   :  { %v667_v35 = vadd.f32 %v663_v34, %v201_v32 }
 0x7c8   :  { %1284 = vtanh.f32 %v667_v35 }
 0x7c9   :  { %1286 = vtanh.f32 %v666_v33 }
 0x7d5   :  { %v1285_v37 = vpop.eup %1284 }
 0x7d6   :  { %v671_v39 = vmul.f32 %v1285_v37, %v1573_v36  ;;  %v1287_v41 = vpop.eup %1286 }
 0x7d7   :  { %v670_v1 = vmul.f32 %v1287_v41, %v1580_v42  ;;  %v219_v41 = vadd.f32 %v1682_v52, %v1570_v28 }
 0x7d8   :  { %v673_v40 = vadd.f32 %v671_v39, %v1575_v38  ;;  %v217_v39 = vadd.f32 %v1680_v51, %v1567_v24 }
 0x7d9   :  { %v672_v43 = vadd.f32 %v670_v1, %v1582_v44 }
 0x7da   :  { %676 = vrot.lane.b32.xlu1 %v673_v40, %s1410_s3 }
 0x7db   :  { %v674_v46 = vmul.f32 %v672_v43, %v582_v25 }
 0x84c   :  { %v677_v45 = vpop.permute.xlu1 %676 }
 0x84d   :  { %v679_v55 = vmul.f32 %v677_v45, %v672_v43 }
 0x84f   :  { %681 = vrot.lane.b32.xlu0 %v679_v55, %s1410_s3 }
 0x8c1   :  { %v682_v56 = vpop.permute.xlu0 %681 }
 0x8c2   :  { %v684_v57 = vadd.f32 %v682_v56, %v674_v46 }
 0x8c4   :  { %1288 = vtanh.f32 %v684_v57 }
 0x8d1   :  { %v1289_v58 = vpop.eup %1288 }
 0x8d2   :  { %687 = vrot.lane.b32.xlu1 %v1289_v58, %s1410_s3 }
 0x944   :  { %v688_v59 = vpop.permute.xlu1 %687 }
 0x945   :  { %v690_v60 = vmul.f32 %v688_v59, %v673_v40 }
 0x947   :  { %1222 = vmatmul.mubr.msk.f32.vlgmr.msra.gmra.mxu0 %vm263_vm1, %v690_v60 }
 0x948   :  { %918 = vmatpush1.msra.mxu0 %v1471_v2  ;;  %965 = vmatprep.mubr.f32.mxu0 %v1409_v0 }
 0x949   :  { %919 = vmatprep.subr.mxu0 %v1473_v3 }
 0x94a   :  { %920 = vmatpush1.msra.mxu0 %v1476_v4 }
 0x94b   :  { %921 = vmatprep.subr.mxu0 %v1479_v5 }
 0x94c   :  { %922 = vmatpush1.msra.mxu0 %v1482_v6 }
 0x94d   :  { %923 = vmatprep.subr.mxu0 %v1488_v8 }
 0x94e   :  { %924 = vmatpush1.msra.mxu0 %v1497_v11 }
 0x94f   :  { %925 = vmatprep.subr.mxu0 %v1500_v12 }
 0x950   :  { %926 = vmatpush1.msra.mxu0 %v1504_v13 }
 0x951   :  { %927 = vmatprep.subr.mxu0 %v1508_v14 }
 0x952   :  { %928 = vmatpush1.msra.mxu0 %v1512_v15 }
 0x953   :  { %929 = vmatprep.subr.mxu0 %v1516_v16 }
 0x954   :  { %930 = vmatpush1.msra.mxu0 %v1520_v17 }
 0x955   :  { %931 = vmatprep.subr.mxu0 %v1524_v18 }
 0x956   :  { %932 = vmatpush1.msra.mxu0 %v1528_v19 }
 0x957   :  { %1238 = vmatprep.subr.mxu0 %v1409_v0 }
 0xa07   :  { %v763_v62 = vpop.f32.mrf.mxu0 }
 0xa08   :  { %v768_v7 = vadd.f32 %v763_v62, %v205_v61 }
 0xa09   :  { %v765_v9 = vpop.f32.mrf.mxu0 }
 0xa0a   :  { %v769_v10 = vadd.f32 %v765_v9, %v207_v63 }
 0xa0c   :  { %1290 = vtanh.f32 %v769_v10  ;;  %v223_v10 = vadd.f32 %v1684_v53, %v1567_v24 }
 0xa0d   :  { %1292 = vtanh.f32 %v768_v7 }
 0xa19   :  { %v1291_v20 = vpop.eup %1290 }
 0xa1a   :  { %v773_v21 = vmul.f32 %v1291_v20, %v1573_v36  ;;  %v1293_v23 = vpop.eup %1292 }
 0xa1b   :  { %v772_v25 = vmul.f32 %v1293_v23, %v1580_v42 }
 0xa1c   :  { %v775_v22 = vadd.f32 %v773_v21, %v1575_v38  ;;  %v225_v21 = vadd.f32 %v1686_v54, %v1570_v28  ;;  %v1101_v54 = vld [vmem:[%s1850_s6 + $0x10] sm:$0xff] }
 0xa1d   :  { %v774_v47 = vadd.f32 %v772_v25, %v1582_v44 }
 0xa1e   :  { %778 = vrot.lane.b32.xlu0 %v775_v22, %s1410_s3 }
 0xa1f   :  { %v776_v48 = vmul.f32 %v774_v47, %v684_v57 }
 0xa90   :  { %v779_v26 = vpop.permute.xlu0 %778 }
 0xa91   :  { %v781_v27 = vmul.f32 %v779_v26, %v774_v47 }
 0xa93   :  { %783 = vrot.lane.b32.xlu1 %v781_v27, %s1410_s3 }
 0xb05   :  { %v784_v29 = vpop.permute.xlu1 %783 }
 0xb06   :  { %v786_v30 = vadd.f32 %v784_v29, %v776_v48 }
 0xb08   :  { %1294 = vtanh.f32 %v786_v30 }
 0xb15   :  { %v1295_v31 = vpop.eup %1294 }
 0xb16   :  { %789 = vrot.lane.b32.xlu0 %v1295_v31, %s1410_s3  ;;  %v1100_v31 = vld [vmem:[%s1850_s6 + $0x8] sm:$0xff] }
 0xb88   :  { %v790_v32 = vpop.permute.xlu0 %789 }
 0xb89   :  { %v792_v33 = vmul.f32 %v790_v32, %v775_v22 }
 0xb8b   :  { %1223 = vmatmul.mubr.msk.f32.vlgmr.msra.gmra.mxu1 %vm263_vm1, %v792_v33 }
 0xb8c   :  { %1020 = vmatpush1.msra.mxu1 %v1471_v2  ;;  %1067 = vmatprep.mubr.f32.mxu1 %v1409_v0  ;;  %v211_v2 = vadd.f32 %v1676_v49, %v1567_v24 }
 0xb8d   :  { %1021 = vmatprep.subr.mxu1 %v1473_v3 }
 0xb8e   :  { %1022 = vmatpush1.msra.mxu1 %v1476_v4  ;;  %v213_v4 = vadd.f32 %v1678_v50, %v1570_v28  ;;  %v1106_v28 = vld [vmem:[%s1850_s6 + $0x38] sm:$0xff] }
 0xb8f   :  { %1023 = vmatprep.subr.mxu1 %v1479_v5 }
 0xb90   :  { %1024 = vmatpush1.msra.mxu1 %v1482_v6 }
 0xb91   :  { %1025 = vmatprep.subr.mxu1 %v1488_v8 }
 0xb92   :  { %1026 = vmatpush1.msra.mxu1 %v1497_v11 }
 0xb93   :  { %1027 = vmatprep.subr.mxu1 %v1500_v12 }
 0xb94   :  { %1028 = vmatpush1.msra.mxu1 %v1504_v13 }
 0xb95   :  { %1029 = vmatprep.subr.mxu1 %v1508_v14 }
 0xb96   :  { %1030 = vmatpush1.msra.mxu1 %v1512_v15 }
 0xb97   :  { %1031 = vmatprep.subr.mxu1 %v1516_v16 }
 0xb98   :  { %1032 = vmatpush1.msra.mxu1 %v1520_v17 }
 0xb99   :  { %1033 = vmatprep.subr.mxu1 %v1524_v18 }
 0xb9a   :  { %1034 = vmatpush1.msra.mxu1 %v1528_v19 }
 0xc4b   :  { %v865_v3 = vpop.f32.mrf.mxu1 }
 0xc4c   :  { %v870_v5 = vadd.f32 %v865_v3, %v211_v2  ;;  %v1099_v3 = vld [vmem:[%s1850_s6] sm:$0xff] }
 0xc4d   :  { %v867_v6 = vpop.f32.mrf.mxu1 }
 0xc4e   :  { %v871_v8 = vadd.f32 %v867_v6, %v213_v4 }
 0xc50   :  { %1296 = vtanh.f32 %v871_v8  ;;  %v1226_v8 = vld [vmem:[%s1851_s7] ss:$0 sm:$0xff] }
 0xc51   :  { %1298 = vtanh.f32 %v870_v5 }
 0xc5d   :  { %v1297_v11 = vpop.eup %1296 }
 0xc5e   :  { %v875_v12 = vmul.f32 %v1297_v11, %v1573_v36  ;;  %v1299_v14 = vpop.eup %1298 }
 0xc5f   :  { %v874_v15 = vmul.f32 %v1299_v14, %v1580_v42 }
 0xc60   :  { %v877_v13 = vadd.f32 %v875_v12, %v1575_v38 }
 0xc61   :  { %v876_v16 = vadd.f32 %v874_v15, %v1582_v44 }
 0xc62   :  { %880 = vrot.lane.b32.xlu1 %v877_v13, %s1410_s3 }
 0xc63   :  { %v878_v19 = vmul.f32 %v876_v16, %v786_v30 }
 0xcd4   :  { %v881_v17 = vpop.permute.xlu1 %880 }
 0xcd5   :  { %v883_v18 = vmul.f32 %v881_v17, %v876_v16 }
 0xcd7   :  { %885 = vrot.lane.b32.xlu0 %v883_v18, %s1410_s3 }
 0xd49   :  { %v886_v49 = vpop.permute.xlu0 %885 }
 0xd4a   :  { %v888_v50 = vadd.f32 %v886_v49, %v878_v19 }
 0xd4c   :  { %1300 = vtanh.f32 %v888_v50 }
 0xd59   :  { %v1301_v34 = vpop.eup %1300 }
 0xd5a   :  { %891 = vrot.lane.b32.xlu1 %v1301_v34, %s1410_s3 }
 0xdcc   :  { %v892_v35 = vpop.permute.xlu1 %891 }
 0xdcd   :  { %v894_v37 = vmul.f32 %v892_v35, %v877_v13 }
 0xdcf   :  { %1224 = vmatmul.mubr.msk.f32.vlgmr.msra.gmra.mxu0 %vm263_vm1, %v894_v37 }
 0xdd0   :  { %1239 = vmatpush3.msra.mxu0 %v1106_v28  ;;  %1254 = vmatprep.mubr.msk.f32.mxu0 %vm1411_vm2, %v1409_v0 }
 0xdd1   :  { %1240 = vmatprep.subr.mxu0 %v1409_v0 }
 0xe8f   :  { %v967_v40 = vpop.f32.mrf.mxu0 }
 0xe90   :  { %v972_v1 = vadd.f32 %v967_v40, %v217_v39 }
 0xe91   :  { %v969_v43 = vpop.f32.mrf.mxu0 }
 0xe92   :  { %v973_v45 = vadd.f32 %v969_v43, %v219_v41 }
 0xe94   :  { %1302 = vtanh.f32 %v973_v45 }
 0xe95   :  { %1304 = vtanh.f32 %v972_v1 }
 0xea1   :  { %v1303_v55 = vpop.eup %1302 }
 0xea2   :  { %v977_v46 = vmul.f32 %v1303_v55, %v1573_v36  ;;  %v1305_v57 = vpop.eup %1304 }
 0xea3   :  { %v976_v58 = vmul.f32 %v1305_v57, %v1580_v42 }
 0xea4   :  { %v979_v56 = vadd.f32 %v977_v46, %v1575_v38 }
 0xea5   :  { %v978_v51 = vadd.f32 %v976_v58, %v1582_v44 }
 0xea6   :  { %982 = vrot.lane.b32.xlu0 %v979_v56, %s1410_s3 }
 0xea7   :  { %v980_v52 = vmul.f32 %v978_v51, %v888_v50 }
 0xf18   :  { %v983_v59 = vpop.permute.xlu0 %982 }
 0xf19   :  { %v985_v60 = vmul.f32 %v983_v59, %v978_v51 }
 0xf1b   :  { %987 = vrot.lane.b32.xlu1 %v985_v60, %s1410_s3 }
 0xf8d   :  { %v988_v61 = vpop.permute.xlu1 %987 }
 0xf8e   :  { %v990_v62 = vadd.f32 %v988_v61, %v980_v52 }
 0xf90   :  { %1306 = vtanh.f32 %v990_v62 }
 0xf9d   :  { %v1307_v63 = vpop.eup %1306 }
 0xf9e   :  { %993 = vrot.lane.b32.xlu0 %v1307_v63, %s1410_s3 }
0x1010   :  { %v994_v7 = vpop.permute.xlu0 %993 }
0x1011   :  { %v996_v9 = vmul.f32 %v994_v7, %v979_v56 }
0x1013   :  { %1225 = vmatmul.mubr.msk.f32.vlgmr.msra.gmra.mxu1 %vm263_vm1, %v996_v9 }
0x10d3   :  { %v1069_v20 = vpop.f32.mrf.mxu1 }
0x10d4   :  { %v1074_v22 = vadd.f32 %v1069_v20, %v223_v10 }
0x10d5   :  { %v1071_v23 = vpop.f32.mrf.mxu1 }
0x10d6   :  { %v1075_v25 = vadd.f32 %v1071_v23, %v225_v21 }
0x10d8   :  { %1308 = vtanh.f32 %v1075_v25 }
0x10d9   :  { %1310 = vtanh.f32 %v1074_v22 }
0x10e5   :  { %v1309_v47 = vpop.eup %1308 }
0x10e6   :  { %v1079_v26 = vmul.f32 %v1309_v47, %v1573_v36  ;;  %v1311_v48 = vpop.eup %1310  ;;  %v1105_v36 = vld [vmem:[%s1850_s6 + $0x30] sm:$0xff] }
0x10e7   :  { %v1078_v29 = vmul.f32 %v1311_v48, %v1580_v42  ;;  %1241 = vmatpush3.msra.mxu0 %v1105_v36  ;;  %v1103_v42 = vld [vmem:[%s1850_s6 + $0x20] sm:$0xff] }
0x10e8   :  { %v1081_v27 = vadd.f32 %v1079_v26, %v1575_v38  ;;  %v1104_v38 = vld [vmem:[%s1850_s6 + $0x28] sm:$0xff]  ;;  %1242 = vmatprep.subr.mxu0 %v1409_v0 }
0x10e9   :  { %v1080_v24 = vadd.f32 %v1078_v29, %v1582_v44  ;;  %1243 = vmatpush3.msra.mxu0 %v1104_v38  ;;  %v1102_v44 = vld [vmem:[%s1850_s6 + $0x18] sm:$0xff]  ;;  %s1412_s6 = smov [#allocation9]  }
0x10ea   :  { %1084 = vrot.lane.b32.xlu1 %v1081_v27, %s1410_s3  ;;  %1244 = vmatprep.subr.mxu0 %v1409_v0  ;;  %s1201_s9 = sshll.u32 %s1412_s6, 4  ;;  %s1202_s9 = int_to_ptr.vmem [resolvable:$true] %s1201_s9 }
0x10eb   :  { %1245 = vmatpush3.msra.mxu0 %v1103_v42  ;;  %v1082_v32 = vmul.f32 %v1080_v24, %v990_v62  ;;  %p1383_p2 = scmp.lt.s32.totalorder %s1202_s9, %s1202_s9 }
0x10ec   :  { %1246 = vmatprep.subr.mxu0 %v1409_v0 }
0x10ed   :  { %1247 = vmatpush3.msra.mxu0 %v1102_v44 }
0x10ee   :  { %1248 = vmatprep.subr.mxu0 %v1409_v0 }
0x10ef   :  { %1249 = vmatpush3.msra.mxu0 %v1101_v54 }
0x10f0   :  { %1250 = vmatprep.subr.mxu0 %v1409_v0 }
0x10f1   :  { %1251 = vmatpush3.msra.mxu0 %v1100_v31 }
0x10f2   :  { %1252 = vmatprep.subr.mxu0 %v1409_v0 }
0x10f3   :  { %1253 = vmatpush3.msra.mxu0 %v1099_v3 }
0x115c   :  { %v1085_v53 = vpop.permute.xlu1 %1084 }
0x115d   :  { %v1087_v30 = vmul.f32 %v1085_v53, %v1080_v24 }
0x115f   :  { %1089 = vrot.lane.b32.xlu0 %v1087_v30, %s1410_s3 }
0x11d1   :  { %v1090_v33 = vpop.permute.xlu0 %1089 }
0x11d2   :  { %v1092_v2 = vadd.f32 %v1090_v33, %v1082_v32 }
0x11d4   :  { %1312 = vtanh.f32 %v1092_v2 }
0x11e1   :  { %v1313_v4 = vpop.eup %1312 }
0x11e2   :  { %1095 = vrot.lane.b32.xlu1 %v1313_v4, %s1410_s3  ;;  %s1378_s3 = scalar_lea.vmem %s1202_s9, 128 }
0x11e3   :  { %p1379_p1 = scmp.ne.s32.totalorder %s1202_s9, %s1378_s3  ;;  %p1384_p3 = scmp.lt.s32.totalorder %s1378_s3, %s1378_s3 }
0x11e5   :  { %p1385_p4 = por %p1384_p3, %p1383_p2 }
0x11e7   :  { %p1386_p5 = pnand %p1385_p4, %p1379_p1 }
0x1254   :  { %v1096_v5 = vpop.permute.xlu1 %1095 }
0x1255   :  { %v1098_v6 = vmul.f32 %v1096_v5, %v1081_v27 }
0x1257   :  { %1255 = vmatmul.mubr.msk.f32.vlgmr.msra.gmra.mxu0 %vm263_vm1, %v1098_v6 }
0x1317   :  { %v1183_v11 = vpop.f32.mrf.mxu0 }
0x1318   :  { %v1184_v12 = vadd.f32 %v1226_v8, %v1183_v11 }
0x1319   :  { %v1256_v13 = vpop.f32.mrf.mxu0 }
0x131a   :  { %v1228_v14 = vmul.f32 -1.442695, %v1184_v12 }
0x131c   :  { %1314 = vpow2.f32 %v1228_v14 }
0x1329   :  { %v1315_v15 = vpop.eup %1314 }
0x132a   :  { %v1190_v16 = vadd.f32 1.0, %v1315_v15 }
0x132c   :  { %1316 = vrcp.f32 %v1190_v16 }
0x1339   :  { %v1317_v0 = vpop.eup %1316 }
0x133a   :  { %v1193_v17 = vmul.f32 2.0, %v1317_v0 }
0x133c   :  { %1194 = vst [vmem:[#allocation9] sm:$0xff] %v1193_v17 }
0x133d   :  { %1389 = shalt.err (!%p1386_p5)
}
0x133e   :  { %1204 = dma.vmem_to_hbm [thread:$0]  %s1202_s9, 128, %s1852_s8, [#allocation5]  }
0x133f   :  { %1402 = dma.done.wait [#allocation5], 128  }
0x1340   :  { %1403 = vsyncadd [#allocation5], 4294967168 }
0x1341   :  { %1208 = vsyncpa [#allocation4], 1 }
0x1342   :  { %1209 = vsyncpa [#allocation7], 1 }
0x1343   :  { %1210 = vsyncpa [#allocation5], 1 }

</bundles_post_ra>
